<compile_context>
chip_gen: v6e
topology: v6e:2x2x1
jax: 0.10.0
libtpu: 0.0.40
codegen_flags: <defaults>
</compile_context>

<pallas_src>
import jax
import jax.numpy as jnp
import numpy as np
from jax.experimental import pallas as pl
from jax.experimental.pallas import tpu as pltpu


# ----------------------------- Pallas kernel -------------------------------

def ngram_score_kernel(prev_ref, next_ref, table_t_ref, out_ref):
    """Per-bigram probability lookup, lane-major.

    prev_ref   : [1, M] int32  context word ids (<s> prepended)
    next_ref   : [1, M] int32  next word ids (</s> appended)
    table_t_ref: [V, V] f32    transposed bigram table, table_t[n, p] = P(n | p)
    out_ref    : [1, M] f32    P(next[m] | prev[m]) per bigram position
    """
    V = table_t_ref.shape[0]
    M = prev_ref.shape[1]

    iota_v = jax.lax.broadcasted_iota(jnp.int32, (V, M), 0)      # sublane iota
    oh_prev = (iota_v == prev_ref[...]).astype(jnp.float32)      # [V, M]
    oh_next = (iota_v == next_ref[...]).astype(jnp.float32)      # [V, M]

    # rows[n, m] = P(n | prev[m])  -- one-hot gather on the MXU (exact in f32)
    rows = jnp.dot(table_t_ref[...], oh_prev,
                   preferred_element_type=jnp.float32)           # [V, M]

    # select n == next[m]; sublane reduce to a lane-dense [1, M] slab
    out_ref[...] = jnp.sum(rows * oh_next, axis=0, keepdims=True)


# ------------------------------- JAX glue -----------------------------------

def make_bigrams(tokens, lengths, bos, eos):
    """Build (prev, next, mask) bigram arrays with <s>/</s> padding.

    tokens : [B, L] int32, lengths : [B] int32 (1 <= length <= L)
    returns prev/next [B, L+1] int32 and mask [B, L+1] float32.
    """
    B, L = tokens.shape
    bos_col = jnp.full((B, 1), bos, jnp.int32)
    eos_col = jnp.full((B, 1), eos, jnp.int32)
    prev = jnp.concatenate([bos_col, tokens], axis=1)             # [B, L+1]
    nxt = jnp.concatenate([tokens, eos_col], axis=1)              # [B, L+1]
    pos = jnp.arange(L + 1, dtype=jnp.int32)[None, :]
    # position j == length gets </s> as the next word
    nxt = jnp.where(pos == lengths[:, None], eos, nxt).astype(jnp.int32)
    mask = (pos <= lengths[:, None]).astype(jnp.float32)          # length+1 bigrams
    return prev, nxt, mask


def lm_ngram_forward(tokens, lengths, table, bos, eos):
    """Forward pass of LM_nGram: mean bigram probability per sequence, [B, 1]."""
    prev, nxt, mask = make_bigrams(tokens, lengths, bos, eos)
    B, Lb = prev.shape
    M = B * Lb
    V = table.shape[0]

    # Layout plumbing lives in the wrapper (handled by XLA / the HBM->VMEM DMA):
    prev_row = prev.reshape(1, M).astype(jnp.int32)
    next_row = nxt.reshape(1, M).astype(jnp.int32)
    table_t = table.T                                             # table_t[n, p] = P(n|p)

    scores = pl.pallas_call(
        ngram_score_kernel,
        out_shape=jax.ShapeDtypeStruct((1, M), jnp.float32),
        grid=(1,),
        in_specs=[
            pl.BlockSpec((1, M), lambda i: (0, 0)),
            pl.BlockSpec((1, M), lambda i: (0, 0)),
            pl.BlockSpec((V, V), lambda i: (0, 0)),
        ],
        out_specs=pl.BlockSpec((1, M), lambda i: (0, 0)),
        compiler_params=pltpu.CompilerParams(
            dimension_semantics=("arbitrary",)),
    )(prev_row, next_row, table_t)

    # Trivial masked mean / divide in the wrapper (moves the sub-128-lane
    # reduction and the divide out of the kernel).
    scores = scores.reshape(B, Lb)
    ssum = jnp.sum(scores * mask, axis=-1, keepdims=True)         # [B, 1]
    cnt = jnp.sum(mask, axis=-1, keepdims=True)                   # [B, 1]
    return ssum / cnt


def fit_mle_bigram_table(tokens, lengths, vocab, bos, eos):
    """MLE bigram fit (= self.ngram.fit): count(prev,next) / count(prev)."""
    prev, nxt, mask = make_bigrams(tokens, lengths, bos, eos)
    flat = (prev * vocab + nxt).reshape(-1)
    counts = jnp.zeros((vocab * vocab,), jnp.float32).at[flat].add(mask.reshape(-1))
    counts = counts.reshape(vocab, vocab)
    ctx = counts.sum(axis=1, keepdims=True)
    table = jnp.where(ctx > 0, counts / jnp.maximum(ctx, 1.0), 0.0)
    return table.astype(jnp.float32)


# ------------------------------- main ---------------------------------------

if __name__ == "__main__":
    key = jax.random.PRNGKey(0)

    # Small, deterministic synthetic setup.
    V_WORDS = 30                  # ordinary vocabulary words
    VOCAB = V_WORDS + 2           # + <s>, </s>
    BOS = V_WORDS                 # id of <s>
    EOS = V_WORDS + 1             # id of </s>
    B = 8                         # batch of "steps" to score
    L = 15                        # max tokens per step -> 16 bigram slots (M = 128)
    B_TRAIN = 16                  # synthetic training corpus for .fit()

    k1, k2, k3, k4 = jax.random.split(key, 4)

    # "fit(steps)": synthetic training sequences -> MLE bigram table.
    train_tokens = jax.random.randint(k1, (B_TRAIN, L), 0, V_WORDS, dtype=jnp.int32)
    train_lengths = jax.random.randint(k2, (B_TRAIN,), 3, L + 1, dtype=jnp.int32)
    table = fit_mle_bigram_table(train_tokens, train_lengths, VOCAB, BOS, EOS)

    # "forward(steps)": sequences to score.
    tokens = jax.random.randint(k3, (B, L), 0, V_WORDS, dtype=jnp.int32)
    lengths = jax.random.randint(k4, (B,), 1, L + 1, dtype=jnp.int32)

    out = lm_ngram_forward(tokens, lengths, table, BOS, EOS)
    out = jax.block_until_ready(out)

    # Pure-JAX reference of the same forward (table lookup + masked mean).
    prev_ids, next_ids, mask = make_bigrams(tokens, lengths, BOS, EOS)
    ref_scores = table[prev_ids, next_ids]
    ref = (jnp.sum(ref_scores * mask, axis=-1, keepdims=True)
           / jnp.sum(mask, axis=-1, keepdims=True))
    np.testing.assert_allclose(np.asarray(out), np.asarray(ref), rtol=1e-5, atol=1e-6)

    # TODO(synk): nltk's per-100-step progress printing and Python-object step
    # inputs (step.tree.list()) have no kernel equivalent; token id arrays are
    # used directly instead.
    print("KERNEL_OK")
</pallas_src>

<mosaic_0001>
module attributes {stable_mosaic.version = 11 : i64} {
  func.func @ngram_score_kernel(%arg0: i32, %arg1: memref<1x128xi32, #tpu.memory_space<vmem>>, %arg2: memref<1x128xi32, #tpu.memory_space<vmem>>, %arg3: memref<32x32xf32, #tpu.memory_space<vmem>>, %arg4: memref<1x128xf32, #tpu.memory_space<vmem>>) attributes {dimension_semantics = [#tpu.dimension_semantics<arbitrary>], iteration_bounds = array<i64: 1>, scalar_prefetch = 0 : i64, scratch_operands = 0 : i64, tpu.core_type = #tpu.core_type<tc>, window_params = [{pipeline_mode = #tpu.pipeline_mode<synchronous>, transform_indices = @transform_0, window_bounds = array<i64: 1, 128>}, {pipeline_mode = #tpu.pipeline_mode<synchronous>, transform_indices = @transform_1, window_bounds = array<i64: 1, 128>}, {pipeline_mode = #tpu.pipeline_mode<synchronous>, transform_indices = @transform_2, window_bounds = array<i64: 32, 32>}, {pipeline_mode = #tpu.pipeline_mode<synchronous>, transform_indices = @transform_3, window_bounds = array<i64: 1, 128>}]} {
    %0 = tpu.iota {dimensions = array<i32: 0>} : vector<32x128xi32>
    %c0 = arith.constant 0 : index
    %c0_0 = arith.constant 0 : index
    %1 = vector.load %arg1[%c0, %c0_0] : memref<1x128xi32, #tpu.memory_space<vmem>>, vector<1x128xi32>
    %2 = vector.broadcast %1 : vector<1x128xi32> to vector<32x128xi32>
    %3 = arith.cmpi eq, %0, %2 : vector<32x128xi32>
    %4 = arith.extui %3 : vector<32x128xi1> to vector<32x128xi32>
    %5 = arith.sitofp %4 : vector<32x128xi32> to vector<32x128xf32>
    %c0_1 = arith.constant 0 : index
    %c0_2 = arith.constant 0 : index
    %6 = vector.load %arg2[%c0_1, %c0_2] : memref<1x128xi32, #tpu.memory_space<vmem>>, vector<1x128xi32>
    %7 = vector.broadcast %6 : vector<1x128xi32> to vector<32x128xi32>
    %8 = arith.cmpi eq, %0, %7 : vector<32x128xi32>
    %9 = arith.extui %8 : vector<32x128xi1> to vector<32x128xi32>
    %10 = arith.sitofp %9 : vector<32x128xi32> to vector<32x128xf32>
    %c0_3 = arith.constant 0 : index
    %c0_4 = arith.constant 0 : index
    %11 = vector.load %arg3[%c0_3, %c0_4] : memref<32x32xf32, #tpu.memory_space<vmem>>, vector<32x32xf32>
    %cst = arith.constant dense<0.000000e+00> : vector<32x128xf32>
    %12 = tpu.matmul %11, %5, %cst {dimension_numbers = #tpu.dot_dimension_numbers<[1], [0], [0], [1], [0, 0, 1, 1], [], []>} : vector<32x32xf32>, vector<32x128xf32>, vector<32x128xf32> -> vector<32x128xf32>
    %13 = arith.mulf %12, %10 : vector<32x128xf32>
    %cst_5 = arith.constant dense<0.000000e+00> : vector<128xf32>
    %14 = vector.multi_reduction <add>, %13, %cst_5 [0] : vector<32x128xf32> to vector<128xf32>
    %15 = vector.shape_cast %14 : vector<128xf32> to vector<1x128xf32>
    %c0_6 = arith.constant 0 : index
    %c0_7 = arith.constant 0 : index
    %16 = vector.load %arg4[%c0_6, %c0_7] : memref<1x128xf32, #tpu.memory_space<vmem>>, vector<1x128xf32>
    tpu.vector_store %arg4[%c0_6, %c0_7], %15 {strides = array<i32>} : memref<1x128xf32, #tpu.memory_space<vmem>>, vector<1x128xf32>,
    return
  }
  func.func @transform_0(%arg0: i32) -> (i32, i32) {
    %c0_i32 = arith.constant 0 : i32
    %c0_i32_0 = arith.constant 0 : i32
    %c0_i32_1 = arith.constant 0 : i32
    return %c0_i32, %c0_i32_0 : i32, i32
  }
  func.func @transform_1(%arg0: i32) -> (i32, i32) {
    %c0_i32 = arith.constant 0 : i32
    %c0_i32_0 = arith.constant 0 : i32
    %c0_i32_1 = arith.constant 0 : i32
    return %c0_i32, %c0_i32_0 : i32, i32
  }
  func.func @transform_2(%arg0: i32) -> (i32, i32) {
    %c0_i32 = arith.constant 0 : i32
    %c0_i32_0 = arith.constant 0 : i32
    %c0_i32_1 = arith.constant 0 : i32
    return %c0_i32, %c0_i32_0 : i32, i32
  }
  func.func @transform_3(%arg0: i32) -> (i32, i32) {
    %c0_i32 = arith.constant 0 : i32
    %c0_i32_0 = arith.constant 0 : i32
    %c0_i32_1 = arith.constant 0 : i32
    return %c0_i32, %c0_i32_0 : i32, i32
  }
}

</mosaic_0001>

<bundles_post_ra>
// kernel: tpu_custom_call.1
= control target key start
LH: loop header
LB: loop body
LE: loop exit
PB: predicated region body
PF: predicated region fallthrough
CT: control target
= control target key end

     0   :  { %8 = vsyncpa [#allocation3], 0  ;;  %s376_s0 = inlined_call_operand.hbm [shape: s32[1,128], index: 0, kind: input, shape index: {}]   ;;  %s377_s1 = inlined_call_operand.vmem [shape: s32[1,128], index: 1, kind: input, shape index: {}]   ;;  %s378_s2 = inlined_call_operand.hbm [shape: f32[32,32], index: 2, kind: input, shape index: {}]   ;;  %s379_s3 = inlined_call_operand.hbm [shape: f32[1,128], index: 3, kind: output, shape index: {}]  }
   0x1   :  { %9 = vsyncpa [#allocation6], 0 }
   0x2   :  { %10 = vsyncpa [#allocation4], 0  ;;  %s333_s12 = smov [#allocation2]   ;;  %s334_s14 = smov [#allocation5]  }
   0x3   :  { %s17_s13 = sshll.u32 %s333_s12, 4  ;;  %s28_s15 = sshll.u32 %s334_s14, 4  ;;  %s18_s13 = int_to_ptr.vmem [resolvable:$true] %s17_s13  ;;  %s29_s15 = int_to_ptr.vmem [resolvable:$true] %s28_s15 }
   0x4   :  { %s275_s16 = scalar_lea.vmem %s18_s13, 16  ;;  %s279_s17 = scalar_lea.vmem %s18_s13, 32 }
   0x5   :  { %p276_p0 = scmp.ne.s32.totalorder %s18_s13, %s275_s16  ;;  %p280_p1 = scmp.lt.s32.totalorder %s18_s13, %s18_s13 }
   0x6   :  { %p281_p2 = scmp.lt.s32.totalorder %s279_s17, %s275_s16 }
   0x8   :  { %p282_p3 = por %p281_p2, %p280_p1 }
   0xa   :  { %p283_p4 = pnand %p282_p3, %p276_p0 }
   0xc   :  { %286 = shalt.err (!%p283_p4)
}
   0xd   :  { %20 = dma.hbm_to_vmem [thread:$0]  %s376_s0, 16, %s18_s13, [#allocation3]  }
   0xe   :  { %s295_s20 = scalar_lea.vmem %s29_s15, 512  ;;  %p300_p6 = scmp.lt.s32.totalorder %s29_s15, %s29_s15 }
   0xf   :  { %p296_p5 = scmp.ne.s32.totalorder %s29_s15, %s295_s20  ;;  %p301_p7 = scmp.lt.s32.totalorder %s295_s20, %s295_s20 }
  0x11   :  { %p302_p8 = por %p301_p7, %p300_p6 }
  0x13   :  { %p303_p9 = pnand %p302_p8, %p296_p5 }
  0x15   :  { %306 = shalt.err (!%p303_p9)
}
  0x16   :  { %s335_s21 = smov 128   ;;  %s336_s22 = smov 8  }
  0x17   :  { %34 = dma.hbm_to_vmem [thread:$0]  %s378_s2, 512, %s29_s15, [#allocation6], %s335_s21, %s335_s21, %s336_s22  }
  0x18   :  { %327 = dma.done.wait [#allocation3], 16  }
  0x19   :  { %328 = vsyncadd [#allocation3], 4294967280 }
  0x1a   :  { %329 = dma.done.wait [#allocation6], 512  }
  0x1b   :  { %330 = vsyncadd [#allocation6], 4294966784  ;;  %v41_v0 = vlaneseq  ;;  %vm84_vm0 = vcmask 261120   ;;  %v212_v5 = vld [vmem:[#allocation2] ss:$0 sm:$0xff]  ;;  %v80_v6 = vld [vmem:[#allocation5] sm:$0xff] }
  0x1c   :  { %246 = vmatprep.mubr.msk.f32.mxu0 %vm84_vm0, %v80_v6  ;;  %v337_v7 = vmov 1.0   ;;  %v82_v8 = vld [vmem:[#allocation5 + $0x10] sm:$0xff]  ;;  %v81_v9 = vld [vmem:[#allocation5 + $0x8] sm:$0xff]  ;;  %v83_v10 = vld [vmem:[#allocation5 + $0x18] sm:$0xff]  ;;  %v338_v12 = vmov 0.0  }
  0x1d   :  { %v42_v1 = vshrl.u32 %v41_v0, 7  ;;  %249 = vmatprep.mubr.msk.f32.mxu1 %vm84_vm0, %v82_v8  ;;  %v217_v11 = vld [vmem:[%s377_s1] ss:$0 sm:$0xff]  ;;  %s339_s1 = smov [#allocation7]  }
  0x1e   :  { %s202_s25 = sshll.u32 %s339_s1, 4  ;;  %s203_s25 = int_to_ptr.vmem [resolvable:$true] %s202_s25 }
  0x1f   :  { %v45_v2 = vadd.s32 24, %v42_v1  ;;  %v44_v3 = vadd.s32 16, %v42_v1  ;;  %v43_v4 = vadd.s32 8, %v42_v1  ;;  %vm51_vm4 = vcmp.eq.s32.totalorder %v42_v1, %v212_v5  ;;  %s307_s26 = scalar_lea.vmem %s203_s25, 16  ;;  %s311_s27 = scalar_lea.vmem %s203_s25, 32 }
  0x20   :  { %vm68_vm6 = vcmp.eq.s32.totalorder %v42_v1, %v217_v11  ;;  %p308_p10 = scmp.ne.s32.totalorder %s203_s25, %s307_s26  ;;  %p312_p11 = scmp.lt.s32.totalorder %s203_s25, %s203_s25 }
  0x21   :  { %vm54_vm1 = vcmp.eq.s32.totalorder %v45_v2, %v212_v5  ;;  %vm53_vm2 = vcmp.eq.s32.totalorder %v44_v3, %v212_v5  ;;  %vm52_vm3 = vcmp.eq.s32.totalorder %v43_v4, %v212_v5  ;;  %vm69_vm5 = vcmp.eq.s32.totalorder %v43_v4, %v217_v11  ;;  %p313_p12 = scmp.lt.s32.totalorder %s311_s27, %s307_s26 }
  0x22   :  { %238 = vmatprep.subr.msk.mxu0 %vm54_vm1, %v337_v7  ;;  %252 = vmatprep.subr.msk.mxu1 %vm54_vm1, %v337_v7  ;;  %vm70_vm7 = vcmp.eq.s32.totalorder %v44_v3, %v217_v11  ;;  %v219_v13 = vsel %vm69_vm5, 1.0, %v338_v12  ;;  %v218_v15 = vsel %vm68_vm6, 1.0, %v338_v12  ;;  %vm71_vm8 = vcmp.eq.s32.totalorder %v45_v2, %v217_v11 }
  0x23   :  { %239 = vmatpush3.msk.msra.mxu0 %vm54_vm1, %v337_v7  ;;  %256 = vmatpush3.msk.msra.mxu1 %vm54_vm1, %v337_v7  ;;  %v220_v18 = vsel %vm70_vm7, 1.0, %v338_v12  ;;  %v221_v22 = vsel %vm71_vm8, 1.0, %v338_v12  ;;  %p314_p13 = por %p313_p12, %p312_p11 }
  0x24   :  { %240 = vmatprep.subr.msk.mxu0 %vm53_vm2, %v337_v7  ;;  %253 = vmatprep.subr.msk.mxu1 %vm53_vm2, %v337_v7 }
  0x25   :  { %241 = vmatpush3.msk.msra.mxu0 %vm53_vm2, %v337_v7  ;;  %257 = vmatpush3.msk.msra.mxu1 %vm53_vm2, %v337_v7  ;;  %p315_p0 = pnand %p314_p13, %p308_p10 }
  0x26   :  { %242 = vmatprep.subr.msk.mxu0 %vm52_vm3, %v337_v7  ;;  %254 = vmatprep.subr.msk.mxu1 %vm52_vm3, %v337_v7 }
  0x27   :  { %243 = vmatpush3.msk.msra.mxu0 %vm52_vm3, %v337_v7  ;;  %258 = vmatpush3.msk.msra.mxu1 %vm52_vm3, %v337_v7 }
  0x28   :  { %244 = vmatprep.subr.msk.mxu0 %vm51_vm4, %v337_v7  ;;  %255 = vmatprep.subr.msk.mxu1 %vm51_vm4, %v337_v7 }
  0x29   :  { %245 = vmatpush3.msk.msra.mxu0 %vm51_vm4, %v337_v7  ;;  %259 = vmatpush3.msk.msra.mxu1 %vm51_vm4, %v337_v7 }
  0x2a   :  { %247 = vmatmul.mubr.msk.f32.vlgmr.msra.gmra.mxu0 %vm84_vm0, %v81_v9  ;;  %250 = vmatmul.mubr.msk.f32.vlgmr.msra.gmra.mxu1 %vm84_vm0, %v83_v10 }
  0xea   :  { %v248_v14 = vpop.f32.mrf.mxu0  ;;  %v251_v16 = vpop.f32.mrf.mxu1 }
  0xeb   :  { %v183_v19 = vmul.f32 %v248_v14, %v219_v13  ;;  %v185_v25 = vmul.f32 %v251_v16, %v221_v22 }
  0xec   :  { %v163_v17 = vpop.f32.mrf.mxu0  ;;  %v173_v21 = vpop.f32.mrf.mxu1 }
  0xed   :  { %v182_v20 = vmul.f32 %v218_v15, %v163_v17  ;;  %v184_v24 = vmul.f32 %v220_v18, %v173_v21 }
  0xef   :  { %v186_v23 = vadd.f32 %v183_v19, %v182_v20 }
  0xf1   :  { %v187_v26 = vadd.f32 %v186_v23, %v184_v24 }
  0xf3   :  { %v188_v27 = vadd.f32 %v187_v26, %v185_v25 }
  0xf5   :  { %v189_v28 = vrot.slane %v188_v27, 4 }
  0xf7   :  { %v190_v29 = vadd.f32 %v189_v28, %v188_v27 }
  0xf9   :  { %v191_v30 = vrot.slane %v190_v29, 2 }
  0xfb   :  { %v192_v31 = vadd.f32 %v191_v30, %v190_v29 }
  0xfd   :  { %v193_v32 = vrot.slane %v192_v31, 1 }
  0xff   :  { %v194_v33 = vadd.f32 %v193_v32, %v192_v31 }
 0x101   :  { %195 = vst [vmem:[#allocation7] sm:$0x1] %v194_v33 }
 0x102   :  { %318 = shalt.err (!%p315_p0)
}
 0x103   :  { %205 = dma.vmem_to_hbm [thread:$0]  %s203_s25, 16, %s379_s3, [#allocation4]  }
 0x104   :  { %331 = dma.done.wait [#allocation4], 16  }
 0x105   :  { %332 = vsyncadd [#allocation4], 4294967280 }
 0x106   :  { %209 = vsyncpa [#allocation3], 1 }
 0x107   :  { %210 = vsyncpa [#allocation6], 1 }
 0x108   :  { %211 = vsyncpa [#allocation4], 1 }

</bundles_post_ra>
